<compile_context>
chip_gen: v7x
topology: tpu7x:2x2x1
jax: 0.10.0
libtpu: 0.0.40
codegen_flags: <defaults>
</compile_context>

<pallas_src>
import jax
import jax.numpy as jnp
from jax.experimental import pallas as pl
from jax.experimental.pallas import tpu as pltpu


def _copy_kernel(x_ref, o_ref):
    # Identity copy of the current (tr, L) block.
    o_ref[...] = x_ref[...]


def _pick_lane_width(total):
    """Largest multiple of 128 that divides `total`, capped at 2048 (lane-dense)."""
    for lane_w in range(2048, 0, -128):
        if total % lane_w == 0:
            return lane_w
    return None


def _pick_row_tile(rows_v, lane_w, dtype_bytes, sublane_pack):
    """Row-tile: multiple of the sublane pack, divides rows_v, block <= ~4 MiB."""
    budget_bytes = 4 * 1024 * 1024
    max_rows = max(sublane_pack, budget_bytes // max(1, lane_w * dtype_bytes))
    tr = min(rows_v, max_rows)
    tr = (tr // sublane_pack) * sublane_pack
    while tr >= sublane_pack and rows_v % tr != 0:
        tr -= sublane_pack
    if tr < sublane_pack:
        tr = rows_v  # full-extent block along rows is always legal
    return tr


def flatten_layer(x, num_features, *, materialize=False):
    """Equivalent of PyTorch FlattenLayer(num_features).forward(x).

    Default: metadata-only reshape (no data movement).
    materialize=True: force a physical copy via a tiled Pallas kernel.
    """
    total = x.size
    assert total % num_features == 0, "num_features must divide total element count"
    rows = total // num_features

    if not materialize:
        # Row-major reshape == torch .view on contiguous NCHW; pure metadata.
        return jnp.reshape(x, (rows, num_features))

    dtype_bytes = jnp.dtype(x.dtype).itemsize
    sublane_pack = {4: 8, 2: 16, 1: 32}.get(dtype_bytes, 8)

    lane_w = _pick_lane_width(total)
    if lane_w is None:
        # total not a multiple of 128: fall back to the logical 2-D shape with
        # full-extent feature blocks (always legal, just layout-suboptimal).
        lane_w = num_features
        rows_v = rows
    else:
        rows_v = total // lane_w

    tr = _pick_row_tile(rows_v, lane_w, dtype_bytes, sublane_pack)

    x2d = jnp.reshape(x, (rows_v, lane_w))  # free metadata view
    grid = (rows_v // tr,)

    out2d = pl.pallas_call(
        _copy_kernel,
        out_shape=jax.ShapeDtypeStruct((rows_v, lane_w), x.dtype),
        grid=grid,
        in_specs=[pl.BlockSpec((tr, lane_w), lambda i: (i, 0))],
        out_specs=pl.BlockSpec((tr, lane_w), lambda i: (i, 0)),
        compiler_params=pltpu.CompilerParams(
            dimension_semantics=("parallel",),
            vmem_limit_bytes=64 * 1024 * 1024,
        ),
    )(x2d)

    # Free metadata reshape back to the module's contract.
    return jnp.reshape(out2d, (rows, num_features))


if __name__ == "__main__":
    key = jax.random.PRNGKey(0)

    # Case 1: lane-aligned feature count (batch=2, channels=4, spatial=16x16).
    x1 = jax.random.normal(key, (2, 4, 16, 16), dtype=jnp.float32)
    nf1 = 4 * 16 * 16  # 1024

    y1_fast = flatten_layer(x1, nf1)                      # metadata-only path
    y1_copy = flatten_layer(x1, nf1, materialize=True)    # Pallas copy kernel
    y1_copy = jax.block_until_ready(y1_copy)
    y1_ref = jnp.reshape(x1, (-1, nf1))
    assert y1_fast.shape == (2, nf1) and y1_copy.shape == (2, nf1)
    assert jnp.array_equal(y1_fast, y1_ref)
    assert jnp.array_equal(y1_copy, y1_ref)

    # Case 2: non-128-multiple feature count (exercises the fallback path).
    x2 = jax.random.normal(jax.random.PRNGKey(1), (2, 4, 14, 14), dtype=jnp.float32)
    nf2 = 4 * 14 * 14  # 784
    y2_copy = flatten_layer(x2, nf2, materialize=True)
    y2_copy = jax.block_until_ready(y2_copy)
    y2_ref = jnp.reshape(x2, (-1, nf2))
    assert y2_copy.shape == (2, nf2)
    assert jnp.array_equal(y2_copy, y2_ref)

    print("KERNEL_OK")
</pallas_src>

<mosaic_0001>
module attributes {stable_mosaic.version = 11 : i64} {
  func.func @_copy_kernel(%arg0: i32, %arg1: memref<1x2048xf32, #tpu.memory_space<vmem>>, %arg2: memref<1x2048xf32, #tpu.memory_space<vmem>>) attributes {dimension_semantics = [#tpu.dimension_semantics<parallel>], iteration_bounds = array<i64: 1>, scalar_prefetch = 0 : i64, scratch_operands = 0 : i64, tpu.core_type = #tpu.core_type<tc>, window_params = [{transform_indices = @transform_0, window_bounds = array<i64: 1, 2048>}, {transform_indices = @transform_1, window_bounds = array<i64: 1, 2048>}]} {
    %c0 = arith.constant 0 : index
    %c0_0 = arith.constant 0 : index
    %0 = vector.load %arg1[%c0, %c0_0] : memref<1x2048xf32, #tpu.memory_space<vmem>>, vector<1x2048xf32>
    %c0_1 = arith.constant 0 : index
    %c0_2 = arith.constant 0 : index
    %1 = vector.load %arg2[%c0_1, %c0_2] : memref<1x2048xf32, #tpu.memory_space<vmem>>, vector<1x2048xf32>
    tpu.vector_store %arg2[%c0_1, %c0_2], %0 {strides = array<i32>} : memref<1x2048xf32, #tpu.memory_space<vmem>>, vector<1x2048xf32>,
    return
  }
  func.func @transform_0(%arg0: i32) -> (i32, i32) {
    %c0_i32 = arith.constant 0 : i32
    %c0_i32_0 = arith.constant 0 : i32
    return %arg0, %c0_i32 : i32, i32
  }
  func.func @transform_1(%arg0: i32) -> (i32, i32) {
    %c0_i32 = arith.constant 0 : i32
    %c0_i32_0 = arith.constant 0 : i32
    return %arg0, %c0_i32 : i32, i32
  }
}

</mosaic_0001>

<bundles_post_ra>
// kernel: tpu_custom_call.1
= control target key start
LH: loop header
LB: loop body
LE: loop exit
PB: predicated region body
PF: predicated region fallthrough
CT: control target
= control target key end

     0   :  { %6 = vsyncpa [#allocation3], 0  ;;  %s126_s0 = inlined_call_operand.hbm [shape: f32[1,2048], index: 0, kind: input, shape index: {}]   ;;  %s127_s1 = inlined_call_operand.hbm [shape: f32[1,2048], index: 1, kind: output, shape index: {}]  }
   0x1   :  { %7 = vsyncpa [#allocation4], 0  ;;  %s90_s6 = smov [#allocation2]   ;;  %s42_s10 = scalar_lea.hbm %s126_s0, 256 }
   0x2   :  { %s14_s7 = sshll.u32 %s90_s6, 4  ;;  %p43_p0 = scmp.ne.s32.totalorder %s126_s0, %s42_s10  ;;  %s15_s7 = int_to_ptr.vmem [resolvable:$true] %s14_s7 }
   0x3   :  { %p46_p1 = scmp.lt.u32.totalorder %s42_s10, %s126_s0 }
   0x5   :  { %p48_p2 = pnand %p46_p1, %p43_p0 }
   0x7   :  { %51 = shalt.err (!%p48_p2)
}
   0x8   :  { %s52_s15 = scalar_lea.vmem %s15_s7, 256  ;;  %p57_p4 = scmp.lt.s32.totalorder %s15_s7, %s15_s7 }
   0x9   :  { %p53_p3 = scmp.ne.s32.totalorder %s15_s7, %s52_s15  ;;  %p58_p5 = scmp.lt.s32.totalorder %s52_s15, %s52_s15 }
   0xb   :  { %p59_p6 = por %p58_p5, %p57_p4 }
   0xd   :  { %p60_p7 = pnand %p59_p6, %p53_p3 }
   0xf   :  { %63 = shalt.err (!%p60_p7)
}
  0x10   :  { %17 = dma.hbm_to_vmem [thread:$0]  %s126_s0, 256, %s15_s7, [#allocation3]  }
  0x11   :  { %86 = dma.done.wait [#allocation3], 256  }
  0x12   :  { %87 = vsyncadd [#allocation3], 4294967040  ;;  %s91_s18 = smov [#allocation5]   ;;  %v21_v0 = vld [vmem:[#allocation2] sm:$0xff]  ;;  %v22_v1 = vld [vmem:[#allocation2 + $0x8] sm:$0xff] }
  0x13   :  { %s31_s19 = sshll.u32 %s91_s18, 4  ;;  %23 = vst [vmem:[#allocation5] sm:$0xff] %v21_v0  ;;  %24 = vst [vmem:[#allocation5 + $0x8] sm:$0xff] %v22_v1  ;;  %s32_s19 = int_to_ptr.vmem [resolvable:$true] %s31_s19 }
  0x14   :  { %s64_s20 = scalar_lea.vmem %s32_s19, 256  ;;  %p69_p9 = scmp.lt.s32.totalorder %s32_s19, %s32_s19 }
  0x15   :  { %p65_p8 = scmp.ne.s32.totalorder %s32_s19, %s64_s20  ;;  %p70_p10 = scmp.lt.s32.totalorder %s64_s20, %s64_s20 }
  0x17   :  { %p71_p11 = por %p70_p10, %p69_p9 }
  0x19   :  { %p72_p12 = pnand %p71_p11, %p65_p8 }
  0x1b   :  { %75 = shalt.err (!%p72_p12)
}
  0x1c   :  { %s76_s0 = scalar_lea.hbm %s127_s1, 256 }
  0x1d   :  { %p77_p13 = scmp.ne.s32.totalorder %s127_s1, %s76_s0  ;;  %p80_p0 = scmp.lt.u32.totalorder %s76_s0, %s127_s1 }
  0x1f   :  { %p82_p1 = pnand %p80_p0, %p77_p13 }
  0x21   :  { %85 = shalt.err (!%p82_p1)
}
  0x22   :  { %34 = dma.vmem_to_hbm [thread:$0]  %s32_s19, 256, %s127_s1, [#allocation4]  }
  0x23   :  { %88 = dma.done.wait [#allocation4], 256  }
  0x24   :  { %89 = vsyncadd [#allocation4], 4294967040 }
  0x25   :  { %38 = vsyncpa [#allocation3], 1 }
  0x26   :  { %39 = vsyncpa [#allocation4], 1 }

</bundles_post_ra>
